<compile_context>
chip_gen: v7x
topology: tpu7x:2x2x1
jax: 0.10.0
libtpu: 0.0.40
codegen_flags: <defaults>
</compile_context>

<pallas_src>
import functools

import jax
import jax.numpy as jnp
from jax.experimental import pallas as pl
from jax.experimental.pallas import tpu as pltpu

_LANES = 128      # bins padded to one full 128-lane row
_ACC_ROWS = 8     # accumulator rows padded to a full (8, 128) tile


def _ece_tile_kernel(sm_ref, lab_ref, out_ref, *, n_bins):
    inner = pl.program_id(1)

    @pl.when(inner == 0)
    def _init():
        out_ref[...] = jnp.zeros_like(out_ref)

    sm = sm_ref[...].astype(jnp.float32)          # (T, C) widen in-VMEM
    labels = lab_ref[...]                         # (T, 1) int32
    T, C = sm.shape

    # confidence / prediction (torch.max over dim=1; first index on ties)
    conf = jnp.max(sm, axis=1, keepdims=True)                             # (T, 1)
    col = jax.lax.broadcasted_iota(jnp.int32, (T, C), 1)
    pred = jnp.min(jnp.where(sm == conf, col, C), axis=1, keepdims=True)  # (T, 1)
    acc = (pred == labels).astype(jnp.float32)                            # (T, 1)

    # bin boundaries padded to a full 128-lane row (padded lanes can never match)
    lane = jax.lax.broadcasted_iota(jnp.int32, (1, _LANES), 1)
    lanef = lane.astype(jnp.float32)
    valid = lane < n_bins
    lower = jnp.where(valid, lanef / n_bins, 2.0)
    upper = jnp.where(valid, (lanef + 1.0) / n_bins, 2.0)

    # in_bin: conf > lower & conf <= upper  (same rule as the torch loop)
    in_bin = jnp.logical_and(conf > lower, conf <= upper).astype(jnp.float32)  # (T, 128)

    cnt = jnp.sum(in_bin, axis=0, keepdims=True)                    # (1, 128)
    s_conf = jnp.sum(conf * in_bin, axis=0, keepdims=True)          # (1, 128)
    s_acc = jnp.sum(acc * in_bin, axis=0, keepdims=True)            # (1, 128)

    partial = jnp.concatenate(
        [cnt, s_conf, s_acc,
         jnp.zeros((_ACC_ROWS - 3, _LANES), jnp.float32)], axis=0)  # (8, 128)
    out_ref[...] += partial[None, :, :]


def ece_loss(softmaxes, labels, n_bins=15, tile_rows=None, num_parallel=2):
    """softmaxes: (N, C) float softmax scores; labels: (N,) int class ids."""
    N, C = softmaxes.shape
    if n_bins > _LANES:
        raise ValueError("n_bins must be <= 128")

    itemsize = jnp.dtype(softmaxes.dtype).itemsize
    if tile_rows is None:
        # ~1 MiB per streamed block; the (T, 128) binning temporaries bound T too.
        row_bytes = max(C * itemsize, _LANES * 4)
        tile_rows = max(8, (min(2048, (1 << 20) // row_bytes) // 8) * 8)
    rows_per_core = -(-N // num_parallel)
    tile_rows = max(8, min(tile_rows, ((rows_per_core + 7) // 8) * 8))

    n_inner = max(1, -(-N // (num_parallel * tile_rows)))
    n_pad = num_parallel * n_inner * tile_rows

    sm = softmaxes            # keep native dtype across HBM; cast happens in-kernel
    labels_p = labels
    if n_pad != N:
        # zero-padded rows have conf == 0 -> fall in no bin -> contribute nothing
        sm = jnp.pad(sm, ((0, n_pad - N), (0, 0)))
        labels_p = jnp.pad(labels, (0, n_pad - N))
    labels2 = labels_p.reshape(n_pad, 1).astype(jnp.int32)

    kernel = functools.partial(_ece_tile_kernel, n_bins=n_bins)
    bytes_accessed = (n_pad * C * itemsize + n_pad * 4
                      + num_parallel * _ACC_ROWS * _LANES * 4)
    partials = pl.pallas_call(
        kernel,
        out_shape=jax.ShapeDtypeStruct((num_parallel, _ACC_ROWS, _LANES), jnp.float32),
        grid_spec=pltpu.PrefetchScalarGridSpec(
            num_scalar_prefetch=0,
            grid=(num_parallel, n_inner),
            in_specs=[
                pl.BlockSpec((tile_rows, C), lambda p, i: (p * n_inner + i, 0)),
                pl.BlockSpec((tile_rows, 1), lambda p, i: (p * n_inner + i, 0)),
            ],
            out_specs=pl.BlockSpec((1, _ACC_ROWS, _LANES), lambda p, i: (p, 0, 0)),
        ),
        compiler_params=pltpu.CompilerParams(
            dimension_semantics=("parallel", "arbitrary"),
            vmem_limit_bytes=32 * 1024 * 1024,
        ),
        cost_estimate=pl.CostEstimate(
            flops=int(n_pad * (2 * C + 8 * _LANES)),
            transcendentals=0,
            bytes_accessed=int(bytes_accessed),
        ),
    )(sm, labels2)

    # Global per-bin totals first, THEN the |.| gap (per-tile |.| would be wrong).
    tot = jnp.sum(partials, axis=0)          # (8, 128)
    cnt, s_conf, s_acc = tot[0], tot[1], tot[2]
    gap = jnp.where(cnt > 0.0, jnp.abs(s_conf - s_acc), 0.0)
    ece = jnp.sum(gap) / jnp.float32(N)
    return ece.reshape(1)                    # match torch.zeros(1) shape


if __name__ == "__main__":
    key = jax.random.PRNGKey(0)
    k_logits, k_labels = jax.random.split(key)

    N, C = 128, 16  # small synthetic shapes
    logits = jax.random.normal(k_logits, (N, C), dtype=jnp.float32)
    softmaxes = jax.nn.softmax(logits, axis=1)   # module expects softmax scores
    labels = jax.random.randint(k_labels, (N,), 0, C, dtype=jnp.int32)

    ece = ece_loss(softmaxes, labels, n_bins=15)
    jax.block_until_ready(ece)

    # Pure-JAX reference check (mirrors the PyTorch loop).
    conf = jnp.max(softmaxes, axis=1)
    pred = jnp.argmax(softmaxes, axis=1)
    acc = (pred == labels).astype(jnp.float32)
    ref = jnp.zeros((1,), jnp.float32)
    bounds = jnp.linspace(0.0, 1.0, 16)
    for i in range(15):
        lo, hi = bounds[i], bounds[i + 1]
        in_bin = (conf > lo) & (conf <= hi)
        prop = jnp.mean(in_bin.astype(jnp.float32))
        if float(prop) > 0:
            a = jnp.sum(acc * in_bin) / jnp.sum(in_bin)
            c = jnp.sum(conf * in_bin) / jnp.sum(in_bin)
            ref = ref + jnp.abs(c - a) * prop
    assert jnp.allclose(ece, ref, atol=1e-5), (ece, ref)

    print("KERNEL_OK")
</pallas_src>

<mosaic_0001>
module attributes {stable_mosaic.version = 11 : i64} {
  func.func @_ece_tile_kernel(%arg0: i32, %arg1: i32, %arg2: memref<64x16xf32, #tpu.memory_space<vmem>>, %arg3: memref<64x1xi32, #tpu.memory_space<vmem>>, %arg4: memref<1x8x128xf32, #tpu.memory_space<vmem>>) attributes {dimension_semantics = [#tpu.dimension_semantics<parallel>, #tpu.dimension_semantics<arbitrary>], iteration_bounds = array<i64: 2, 1>, scalar_prefetch = 0 : i64, scratch_operands = 0 : i64, tpu.core_type = #tpu.core_type<tc>, window_params = [{transform_indices = @transform_0, window_bounds = array<i64: 64, 16>}, {transform_indices = @transform_1, window_bounds = array<i64: 64, 1>}, {transform_indices = @transform_2, window_bounds = array<i64: 1, 8, 128>}]} {
    %c0_i32 = arith.constant 0 : i32
    %0 = arith.cmpi eq, %arg1, %c0_i32 : i32
    %1 = arith.extui %0 : i1 to i32
    %c0_i32_0 = arith.constant 0 : i32
    %2 = arith.cmpi ne, %1, %c0_i32_0 : i32
    scf.if %2 {
      %cst_20 = arith.constant 0.000000e+00 : f32
      %56 = vector.broadcast %cst_20 : f32 to vector<1x8x128xf32>
      %c0_21 = arith.constant 0 : index
      %c0_22 = arith.constant 0 : index
      %c0_23 = arith.constant 0 : index
      %57 = vector.load %arg4[%c0_21, %c0_22, %c0_23] : memref<1x8x128xf32, #tpu.memory_space<vmem>>, vector<1x8x128xf32>
      tpu.vector_store %arg4[%c0_21, %c0_22, %c0_23], %56 {strides = array<i32>} : memref<1x8x128xf32, #tpu.memory_space<vmem>>, vector<1x8x128xf32>,
    } else {
    }
    %c0 = arith.constant 0 : index
    %c0_1 = arith.constant 0 : index
    %3 = vector.load %arg2[%c0, %c0_1] : memref<64x16xf32, #tpu.memory_space<vmem>>, vector<64x16xf32>
    %c0_2 = arith.constant 0 : index
    %c0_3 = arith.constant 0 : index
    %4 = vector.load %arg3[%c0_2, %c0_3] : memref<64x1xi32, #tpu.memory_space<vmem>>, vector<64x1xi32>
    %cst = arith.constant dense<0xFF800000> : vector<64xf32>
    %5 = vector.multi_reduction <maximumf>, %3, %cst [1] : vector<64x16xf32> to vector<64xf32>
    %6 = vector.shape_cast %5 : vector<64xf32> to vector<64x1xf32>
    %7 = tpu.iota {dimensions = array<i32: 1>} : vector<64x16xi32>
    %8 = vector.broadcast %6 : vector<64x1xf32> to vector<64x16xf32>
    %9 = arith.cmpf oeq, %3, %8 : vector<64x16xf32>
    %c16_i32 = arith.constant 16 : i32
    %10 = vector.broadcast %c16_i32 : i32 to vector<64x16xi32>
    %11 = arith.select %9, %7, %10 : vector<64x16xi1>, vector<64x16xi32>
    %cst_4 = arith.constant dense<2147483647> : vector<64xi32>
    %12 = vector.multi_reduction <minsi>, %11, %cst_4 [1] : vector<64x16xi32> to vector<64xi32>
    %13 = vector.shape_cast %12 : vector<64xi32> to vector<64x1xi32>
    %14 = arith.cmpi eq, %13, %4 : vector<64x1xi32>
    %15 = arith.extui %14 : vector<64x1xi1> to vector<64x1xi32>
    %16 = arith.sitofp %15 : vector<64x1xi32> to vector<64x1xf32>
    %17 = tpu.iota {dimensions = array<i32: 1>} : vector<1x128xi32>
    %18 = arith.sitofp %17 : vector<1x128xi32> to vector<1x128xf32>
    %c15_i32 = arith.constant 15 : i32
    %19 = vector.broadcast %c15_i32 : i32 to vector<1x128xi32>
    %20 = arith.cmpi slt, %17, %19 : vector<1x128xi32>
    %cst_5 = arith.constant 1.500000e+01 : f32
    %21 = vector.broadcast %cst_5 : f32 to vector<1x128xf32>
    %22 = arith.divf %18, %21 : vector<1x128xf32>
    %cst_6 = arith.constant 2.000000e+00 : f32
    %23 = vector.broadcast %cst_6 : f32 to vector<1x128xf32>
    %24 = arith.select %20, %22, %23 : vector<1x128xi1>, vector<1x128xf32>
    %cst_7 = arith.constant 1.000000e+00 : f32
    %25 = vector.broadcast %cst_7 : f32 to vector<1x128xf32>
    %26 = arith.addf %18, %25 : vector<1x128xf32>
    %cst_8 = arith.constant 1.500000e+01 : f32
    %27 = vector.broadcast %cst_8 : f32 to vector<1x128xf32>
    %28 = arith.divf %26, %27 : vector<1x128xf32>
    %cst_9 = arith.constant 2.000000e+00 : f32
    %29 = vector.broadcast %cst_9 : f32 to vector<1x128xf32>
    %30 = arith.select %20, %28, %29 : vector<1x128xi1>, vector<1x128xf32>
    %31 = vector.broadcast %6 : vector<64x1xf32> to vector<64x128xf32>
    %32 = vector.broadcast %24 : vector<1x128xf32> to vector<64x128xf32>
    %33 = arith.cmpf ogt, %31, %32 : vector<64x128xf32>
    %34 = vector.broadcast %6 : vector<64x1xf32> to vector<64x128xf32>
    %35 = vector.broadcast %30 : vector<1x128xf32> to vector<64x128xf32>
    %36 = arith.cmpf ole, %34, %35 : vector<64x128xf32>
    %37 = arith.andi %33, %36 : vector<64x128xi1>
    %38 = arith.extui %37 : vector<64x128xi1> to vector<64x128xi32>
    %39 = arith.sitofp %38 : vector<64x128xi32> to vector<64x128xf32>
    %cst_10 = arith.constant dense<0.000000e+00> : vector<128xf32>
    %40 = vector.multi_reduction <add>, %39, %cst_10 [0] : vector<64x128xf32> to vector<128xf32>
    %41 = vector.shape_cast %40 : vector<128xf32> to vector<1x128xf32>
    %42 = vector.broadcast %6 : vector<64x1xf32> to vector<64x128xf32>
    %43 = arith.mulf %42, %39 : vector<64x128xf32>
    %cst_11 = arith.constant dense<0.000000e+00> : vector<128xf32>
    %44 = vector.multi_reduction <add>, %43, %cst_11 [0] : vector<64x128xf32> to vector<128xf32>
    %45 = vector.shape_cast %44 : vector<128xf32> to vector<1x128xf32>
    %46 = vector.broadcast %16 : vector<64x1xf32> to vector<64x128xf32>
    %47 = arith.mulf %46, %39 : vector<64x128xf32>
    %cst_12 = arith.constant dense<0.000000e+00> : vector<128xf32>
    %48 = vector.multi_reduction <add>, %47, %cst_12 [0] : vector<64x128xf32> to vector<128xf32>
    %49 = vector.shape_cast %48 : vector<128xf32> to vector<1x128xf32>
    %cst_13 = arith.constant 0.000000e+00 : f32
    %50 = vector.broadcast %cst_13 : f32 to vector<5x128xf32>
    %51 = tpu.concatenate %41, %45, %49, %50 in 0 : vector<1x128xf32>, vector<1x128xf32>, vector<1x128xf32>, vector<5x128xf32> -> vector<8x128xf32>
    %c0_14 = arith.constant 0 : index
    %c0_15 = arith.constant 0 : index
    %c0_16 = arith.constant 0 : index
    %52 = vector.load %arg4[%c0_14, %c0_15, %c0_16] : memref<1x8x128xf32, #tpu.memory_space<vmem>>, vector<1x8x128xf32>
    %53 = vector.shape_cast %51 : vector<8x128xf32> to vector<1x8x128xf32>
    %54 = arith.addf %52, %53 : vector<1x8x128xf32>
    %c0_17 = arith.constant 0 : index
    %c0_18 = arith.constant 0 : index
    %c0_19 = arith.constant 0 : index
    %55 = vector.load %arg4[%c0_17, %c0_18, %c0_19] : memref<1x8x128xf32, #tpu.memory_space<vmem>>, vector<1x8x128xf32>
    tpu.vector_store %arg4[%c0_17, %c0_18, %c0_19], %54 {strides = array<i32>} : memref<1x8x128xf32, #tpu.memory_space<vmem>>, vector<1x8x128xf32>,
    return
  }
  func.func @transform_0(%arg0: i32, %arg1: i32) -> (i32, i32) {
    %c1_i32 = arith.constant 1 : i32
    %0 = arith.muli %arg0, %c1_i32 : i32
    %1 = arith.addi %0, %arg1 : i32
    %c0_i32 = arith.constant 0 : i32
    %c0_i32_0 = arith.constant 0 : i32
    return %1, %c0_i32 : i32, i32
  }
  func.func @transform_1(%arg0: i32, %arg1: i32) -> (i32, i32) {
    %c1_i32 = arith.constant 1 : i32
    %0 = arith.muli %arg0, %c1_i32 : i32
    %1 = arith.addi %0, %arg1 : i32
    %c0_i32 = arith.constant 0 : i32
    %c0_i32_0 = arith.constant 0 : i32
    return %1, %c0_i32 : i32, i32
  }
  func.func @transform_2(%arg0: i32, %arg1: i32) -> (i32, i32, i32) {
    %c0_i32 = arith.constant 0 : i32
    %c0_i32_0 = arith.constant 0 : i32
    %c0_i32_1 = arith.constant 0 : i32
    return %arg0, %c0_i32, %c0_i32_0 : i32, i32, i32
  }
}

</mosaic_0001>

<bundles_post_ra>
// kernel: tpu_custom_call.1
= control target key start
LH: loop header
LB: loop body
LE: loop exit
PB: predicated region body
PF: predicated region fallthrough
CT: control target
= control target key end

     0   :  { %7 = vsyncpa [#allocation3], 0  ;;  %s1210_s0 = inlined_call_operand.vmem [shape: f32[128,16], index: 0, kind: input, shape index: {}]   ;;  %s1211_s1 = inlined_call_operand.vmem [shape: s32[128,1], index: 1, kind: input, shape index: {}]   ;;  %s1212_s2 = inlined_call_operand.hbm [shape: f32[2,8,128], index: 2, kind: output, shape index: {}]  }
   0x1   :  { %9 = vsyncpa [#allocation3 + $0x1], 0  ;;  %s837_s9 = smov 0   ;;  %s839_s10 = smov 0  }
   0x2   :  { %s841_s11 = smov 0   ;;  %s843_s12 = smov 0  }
   0x3   :  { %s845_s13 = smov 0   ;;  %s847_s14 = smov 0  }
   0x4 LB: > { %s645_s15 = sadd.s32 4294967295, %s817_s14   ;;  %s646_s16 = sadd.s32 4294967294, %s817_s14   ;;  %s817_s14 = sphi %s847_s14, %s15_s14   ;;  %s813_s13 = sphi %s845_s13, %s1223_s13   ;;  %s809_s12 = sphi %s843_s12, %s1222_s12   ;;  %s805_s11 = sphi %s841_s11, %s1221_s11   ;;  %s801_s10 = sphi %s839_s10, %s1220_s10   ;;  %s797_s9 = sphi %s837_s9, %s1219_s9  }
   0x5   : > { %s27_s17 = sadd.s32 1, %s813_s13  ;;  %s90_s18 = sadd.s32 1, %s805_s11 }
   0x6   : > { %p29_p0 = scmp.ge.s32.totalorder %s27_s17, 2  ;;  %p100_p1 = scmp.ne.s32.totalorder %s805_s11, %s801_s10 }
   0x7   : > { %p101_p2 = scmp.eq.s32.totalorder %s645_s15, 1  ;;  %p106_p3 = scmp.ne.s32.totalorder %s801_s10, %s797_s9 }
   0x8   : > { %s1225_s17 = smov (%p29_p0, %s27_s17), 0  ;;  %p107_p5 = scmp.eq.s32.totalorder %s646_s16, 1 }
   0x9   : > { %p877_p4 = por %p101_p2, %p100_p1  ;;  %s87_s20 = ssub.s32 %s813_s13, %s1225_s17 }
   0xa   : > { %p649_p6 = scmp.ge.s32.totalorder %s817_s14, 1  ;;  %p88_p7 = scmp.eq.s32.totalorder %s87_s20, 0 }
   0xb   : > { %p884_p8 = por %p107_p5, %p106_p3  ;;  %p147_p9 = scmp.lt.s32.totalorder %s817_s14, 3 }
   0xc   : > { %s890_s22 = scalar_select %p88_p7, %s805_s11, %s90_s18  }
   0xd   : > { %p148_p10 = pnand %p649_p6, %p147_p9 }
   0xe   : > { %s651_s23 = sshll.u32 (!%p148_p10), %s809_s12, 3  ;;  %vm213_vm0 = vcmask (!%p148_p10), 130048   ;;  %v238_v16 = vlaneseq (!%p148_p10)  ;;  %v819_v49 = vmov (!%p148_p10), 0.0   ;;  %s173_s3 = sand.u32 (!%p148_p10), 1, %s801_s10  }
   0xf   : > { %151 = sbr.rel (%p148_p10) target bundleno = 652 (0x28c), region = 28  ;;  %p178_p11 = scmp.lt.s32.totalorder (!%p148_p10), %s651_s23, 15 }
  0x10   : > { %v915_v17 = vand.u32 (!%p148_p10), 127, %v238_v16  ;;  %s650_s4 = sshll.u32 (!%p148_p10), %s173_s3, 3  ;;  %s672_s5 = sshll.u32 (!%p148_p10), %s809_s12, 7 }
  0x11   : > { %s175_s6 = scalar_lea.vmem (!%p148_p10), [#allocation2], %s650_s4  ;;  %s1163_s16 = scalar_lea.hbm (!%p148_p10), %s1212_s2, %s672_s5 }
  0x12   : > { %v400_v18 = vcvt.s32.f32 (!%p148_p10), %v915_v17  ;;  %vm401_vm1 = vcmp.lt.s32.totalorder (!%p148_p10), %v915_v17, 15  ;;  %s566_s7 = sshll.u32 (!%p148_p10), %s175_s6, 4  ;;  %s553_s18 = scalar_lea.sflag (!%p148_p10), [#allocation3], %s173_s3  ;;  %s1165_s7 = int_to_ptr.vmem [resolvable:$true] %s566_s7 }
  0x13   : > { %s739_s20 = scalar_lea.vmem (!%p148_p10), %s1165_s7, 128  ;;  %s821_s12 = smov (!%p148_p10), [#allocation2]  }
  0x14   : > { %v405_v19 = vadd.f32 (!%p148_p10), 1.0, %v400_v18  ;;  %v403_v20 = vmul.f32 (!%p148_p10), 0.06666667, %v400_v18  ;;  %p740_p12 = scmp.ne.s32.totalorder (!%p148_p10), %s1165_s7, %s739_s20 }
  0x16   : > { %s1227_s23 = smov (!%p178_p11, %s651_s23), 15  ;;  %v406_v21 = vmul.f32 0.06666667, %v405_v19  ;;  %v923_v24 = vsel %vm401_vm1, %v403_v20, 2.0  ;;  %p741_p13 = pnand %p740_p12, %p877_p4 }
  0x17   : > { %s652_s24 = sshll.u32 %s1227_s23, 3  ;;  %s743_s23 = sshll.u32 %s821_s12, 4  ;;  %s744_s23 = int_to_ptr.vmem [resolvable:$false] %s743_s23 }
  0x18   : > { %s181_s27 = scalar_lea.vmem %s1210_s0, %s652_s24  ;;  %v929_v27 = vsel %vm401_vm1, %v406_v21, 2.0  ;;  %s1128_s30 = scalar_lea.vmem %s1211_s1, %s652_s24 }
  0x19   : > { %v197_v0 = vld [vmem:[%s181_s27] sm:$0xff]  ;;  %v199_v1 = vld [vmem:[%s181_s27 + $0x10] sm:$0xff]  ;;  %v198_v2 = vld [vmem:[%s181_s27 + $0x8] sm:$0xff]  ;;  %p742_p0 = pneg %p741_p13  ;;  %s745_s24 = scalar_lea.vmem %s744_s23, 256 }
  0x1a   : > { %v214_v3 = vsel %vm213_vm0, %v197_v0, -inf  ;;  %v220_v4 = vsel %vm213_vm0, %v199_v1, -inf  ;;  %v200_v5 = vld [vmem:[%s181_s27 + $0x18] sm:$0xff]  ;;  %v217_v6 = vsel %vm213_vm0, %v198_v2, -inf  ;;  %v201_v8 = vld [vmem:[%s181_s27 + $0x20] sm:$0xff]  ;;  %v202_v9 = vld [vmem:[%s181_s27 + $0x28] sm:$0xff]  ;;  %p746_p1 = scmp.lt.s32.totalorder %s1165_s7, %s744_s23  ;;  %p747_p2 = scmp.lt.s32.totalorder %s745_s24, %s739_s20 }
  0x1b   : > { %215 = vmax.xlane.f32.xlu0 %v214_v3  ;;  %221 = vmax.xlane.f32.xlu1 %v220_v4  ;;  %v223_v7 = vsel %vm213_vm0, %v200_v5, -inf  ;;  %v226_v10 = vsel %vm213_vm0, %v201_v8, -inf  ;;  %v229_v11 = vsel %vm213_vm0, %v202_v9, -inf  ;;  %v907_v12 = vld [vmem:[%s181_s27 + $0x30] sm:$0xff]  ;;  %v909_v13 = vld [vmem:[%s181_s27 + $0x38] sm:$0xff] }
  0x1c   : > { %v232_v14 = vsel %vm213_vm0, %v907_v12, -inf  ;;  %v235_v15 = vsel %vm213_vm0, %v909_v13, -inf  ;;  %p748_p3 = por %p747_p2, %p746_p1 }
  0x1e   : > { %p749_p5 = pnand %p748_p3, %p742_p0 }
  0x1f   : > { %218 = vmax.xlane.f32.xlu0 %v217_v6  ;;  %224 = vmax.xlane.f32.xlu1 %v223_v7 }
  0x23   : > { %227 = vmax.xlane.f32.xlu0 %v226_v10  ;;  %230 = vmax.xlane.f32.xlu1 %v229_v11 }
  0x27   : > { %233 = vmax.xlane.f32.xlu0 %v232_v14  ;;  %236 = vmax.xlane.f32.xlu1 %v235_v15 }
  0xa8   : > { %v919_v22 = vpop.xlane.xlu0 %215  ;;  %v921_v23 = vpop.xlane.xlu1 %221 }
  0xa9   : > { %vm240_vm2 = vcmp.eq.f32.partialorder %v197_v0, %v919_v22  ;;  %vm242_vm3 = vcmp.eq.f32.partialorder %v199_v1, %v921_v23  ;;  %vm408_vm4 = vcmp.gt.f32.partialorder %v919_v22, %v923_v24  ;;  %vm416_vm9 = vcmp.le.f32.partialorder %v919_v22, %v929_v27 }
  0xaa   : > { %v248_v25 = vsel %vm240_vm2, %v915_v17, 16  ;;  %v250_v26 = vsel %vm242_vm3, %v915_v17, 16  ;;  %vm410_vm13 = vcmp.gt.f32.partialorder %v921_v23, %v923_v24  ;;  %vm418_vm14 = vcmp.le.f32.partialorder %v921_v23, %v929_v27  ;;  %vm983_vm15 = vmand %vm408_vm4, %vm416_vm9 }
  0xab   : > { %v932_v28 = vsel %vm213_vm0, %v248_v25, 2147483647  ;;  %v935_v29 = vsel %vm213_vm0, %v250_v26, 2147483647  ;;  %vm426_vm1 = vmand %vm410_vm13, %vm418_vm14  ;;  %v1017_v58 = vsel %vm983_vm15, 1.0, %v819_v49 }
  0xac   : > { %v219_v30 = vpop.xlane.xlu0 %218  ;;  %v939_v31 = vpop.xlane.xlu1 %224  ;;  %v258_v32 = vshra.s32 %v932_v28, 16  ;;  %v288_v33 = vshra.s32 %v935_v29, 16  ;;  %v1034_v1 = vsel %vm426_vm1, 1.0, %v819_v49 }
  0xad   : > { %vm409_vm5 = vcmp.gt.f32.partialorder %v219_v30, %v923_v24  ;;  %vm417_vm6 = vcmp.le.f32.partialorder %v219_v30, %v929_v27  ;;  %vm241_vm7 = vcmp.eq.f32.partialorder %v198_v2, %v219_v30  ;;  %vm243_vm8 = vcmp.eq.f32.partialorder %v200_v5, %v939_v31 }
  0xae   : > { %v948_v34 = vcvt.s32.f32 %v258_v32  ;;  %v249_v35 = vsel %vm241_vm7, %v915_v17, 16  ;;  %v251_v36 = vsel %vm243_vm8, %v915_v17, 16  ;;  %vm958_vm10 = vmand %vm409_vm5, %vm417_vm6  ;;  %v967_v42 = vcvt.s32.f32 %v288_v33 }
  0xaf   : > { %v953_v37 = vsel %vm213_vm0, %v249_v35, 2147483647  ;;  %v956_v38 = vsel %vm213_vm0, %v251_v36, 2147483647  ;;  %v994_v50 = vsel %vm958_vm10, 1.0, %v819_v49  ;;  %v461_v5 = vmul.f32 %v1017_v58, %v919_v22 }
  0xb0   : > { %261 = vmin.xlane.f32.xlu0 %v948_v34  ;;  %v963_v40 = vpop.xlane.xlu0 %227  ;;  %v965_v41 = vpop.xlane.xlu1 %230  ;;  %v273_v43 = vshra.s32 %v953_v37, 16  ;;  %v303_v44 = vshra.s32 %v956_v38, 16  ;;  %v448_v59 = vadd.f32 %v994_v50, %v1017_v58  ;;  %v462_v6 = vmul.f32 %v994_v50, %v219_v30 }
  0xb1   : > { %vm244_vm11 = vcmp.eq.f32.partialorder %v201_v8, %v963_v40  ;;  %vm245_vm12 = vcmp.eq.f32.partialorder %v202_v9, %v965_v41  ;;  %vm419_vm4 = vcmp.le.f32.partialorder %v939_v31, %v929_v27  ;;  %v463_v8 = vmul.f32 %v1034_v1, %v921_v23 }
  0xb2   : > { %v987_v46 = vcvt.s32.f32 %v273_v43  ;;  %v252_v47 = vsel %vm244_vm11, %v915_v17, 16  ;;  %v253_v48 = vsel %vm245_vm12, %v915_v17, 16  ;;  %v1004_v55 = vcvt.s32.f32 %v303_v44 }
  0xb3   : > { %v997_v51 = vsel %vm213_vm0, %v252_v47, 2147483647  ;;  %v1000_v52 = vsel %vm213_vm0, %v253_v48, 2147483647  ;;  %v469_v9 = vadd.f32 %v462_v6, %v461_v5  ;;  %v449_v11 = vadd.f32 %v1034_v1, %v448_v59 }
  0xb4   : > { %291 = vmin.xlane.f32.xlu0 %v967_v42  ;;  %276 = vmin.xlane.f32.xlu1 %v987_v46  ;;  %v234_v53 = vpop.xlane.xlu0 %233  ;;  %v237_v54 = vpop.xlane.xlu1 %236  ;;  %v318_v56 = vshra.s32 %v997_v51, 16  ;;  %v333_v57 = vshra.s32 %v1000_v52, 16  ;;  %vm412_vm6 = vcmp.gt.f32.partialorder %v963_v40, %v923_v24  ;;  %vm420_vm7 = vcmp.le.f32.partialorder %v963_v40, %v929_v27 }
  0xb5   : > { %vm246_vm2 = vcmp.eq.f32.partialorder %v907_v12, %v234_v53  ;;  %vm247_vm3 = vcmp.eq.f32.partialorder %v909_v13, %v237_v54  ;;  %vm413_vm8 = vcmp.gt.f32.partialorder %v965_v41, %v923_v24  ;;  %v470_v15 = vadd.f32 %v469_v9, %v463_v8  ;;  %vm428_vm9 = vmand %vm412_vm6, %vm420_vm7 }
  0xb6   : > { %v1023_v60 = vcvt.s32.f32 %v318_v56  ;;  %v254_v61 = vsel %vm246_vm2, %v915_v17, 16  ;;  %v255_v62 = vsel %vm247_vm3, %v915_v17, 16  ;;  %v1038_v2 = vcvt.s32.f32 %v333_v57 }
  0xb7   : > { %v1028_v63 = vsel %vm213_vm0, %v254_v61, 2147483647  ;;  %v1031_v0 = vsel %vm213_vm0, %v255_v62, 2147483647  ;;  %vm411_vm0 = vcmp.gt.f32.partialorder %v939_v31, %v923_v24  ;;  %vm421_vm10 = vcmp.le.f32.partialorder %v965_v41, %v929_v27 }
  0xb8   : > { %306 = vmin.xlane.f32.xlu1 %v1004_v55  ;;  %321 = vmin.xlane.f32.xlu0 %v1023_v60  ;;  %v348_v3 = vshra.s32 %v1028_v63, 16  ;;  %v363_v4 = vshra.s32 %v1031_v0, 16  ;;  %vm427_vm5 = vmand %vm411_vm0, %vm419_vm4  ;;  %vm414_vm11 = vcmp.gt.f32.partialorder %v234_v53, %v923_v24  ;;  %v1074_v16 = vsel %vm428_vm9, 1.0, %v819_v49 }
  0xb9   : > { %v1054_v10 = vsel %vm427_vm5, 1.0, %v819_v49  ;;  %vm429_vm12 = vmand %vm413_vm8, %vm421_vm10  ;;  %vm422_vm13 = vcmp.le.f32.partialorder %v234_v53, %v929_v27  ;;  %vm415_vm14 = vcmp.gt.f32.partialorder %v237_v54, %v923_v24  ;;  %vm423_vm15 = vcmp.le.f32.partialorder %v237_v54, %v929_v27 }
  0xba   : > { %v1049_v7 = vcvt.s32.f32 %v348_v3  ;;  %v1061_v12 = vcvt.s32.f32 %v363_v4  ;;  %v464_v13 = vmul.f32 %v1054_v10, %v939_v31  ;;  %v450_v14 = vadd.f32 %v1054_v10, %v449_v11  ;;  %vm430_vm1 = vmand %vm414_vm11, %vm422_vm13 }
  0xbb   : > { %v465_v19 = vmul.f32 %v1074_v16, %v963_v40  ;;  %v1083_v20 = vsel %vm429_vm12, 1.0, %v819_v49  ;;  %v1089_v22 = vsel %vm430_vm1, 1.0, %v819_v49  ;;  %vm431_vm2 = vmand %vm415_vm14, %vm423_vm15  ;;  %vm543_vm3 = vcmask 1040384  }
  0xbc   : > { %336 = vmin.xlane.f32.xlu1 %v1038_v2  ;;  %351 = vmin.xlane.f32.xlu0 %v1049_v7  ;;  %v471_v17 = vadd.f32 %v470_v15, %v464_v13  ;;  %v451_v18 = vadd.f32 %v1074_v16, %v450_v14  ;;  %v466_v21 = vmul.f32 %v1083_v20, %v965_v41  ;;  %v1094_v26 = vsel %vm431_vm2, 1.0, %v819_v49 }
  0xbd   : > { %v467_v25 = vmul.f32 %v1089_v22, %v234_v53  ;;  %v468_v31 = vmul.f32 %v1094_v26, %v237_v54  ;;  %v257_v54 = vand.u32 65535, %v932_v28  ;;  %v272_v3 = vand.u32 65535, %v953_v37 }
  0xbe   : > { %v472_v23 = vadd.f32 %v471_v17, %v465_v19  ;;  %v452_v24 = vadd.f32 %v1083_v20, %v451_v18  ;;  %v287_v4 = vand.u32 65535, %v935_v29  ;;  %v302_v13 = vand.u32 65535, %v956_v38 }
  0xbf   : > { %v259_v62 = vcvt.s32.f32 %v257_v54  ;;  %v274_v9 = vcvt.s32.f32 %v272_v3  ;;  %v317_v14 = vand.u32 65535, %v997_v51  ;;  %v332_v18 = vand.u32 65535, %v1000_v52 }
  0xc0   : > { %366 = vmin.xlane.f32.xlu1 %v1061_v12  ;;  %v473_v27 = vadd.f32 %v472_v23, %v466_v21  ;;  %v453_v30 = vadd.f32 %v1089_v22, %v452_v24  ;;  %v289_v11 = vcvt.s32.f32 %v287_v4  ;;  %v304_v15 = vcvt.s32.f32 %v302_v13  ;;  %v209_v13 = vld [vmem:[%s1128_s30 + $0x20] sm:$0xff] }
  0xc1   : > { %v319_v17 = vcvt.s32.f32 %v317_v14  ;;  %v347_v19 = vand.u32 65535, %v1028_v63  ;;  %v334_v21 = vcvt.s32.f32 %v332_v18  ;;  %v362_v24 = vand.u32 65535, %v1031_v0 }
  0xc2   : > { %v474_v32 = vadd.f32 %v473_v27, %v467_v25  ;;  %v454_v33 = vadd.f32 %v1094_v26, %v453_v30  ;;  %v820_v27 = vmov 0  }
  0xc3   : > { %v349_v23 = vcvt.s32.f32 %v347_v19  ;;  %v364_v63 = vcvt.s32.f32 %v362_v24  ;;  %738 = vset.pattern.permute.xlu1 %v820_v27  ;;  %732 = vset.pattern.permute.xlu0 %v820_v27 }
  0xc4   : > { %v455_v35 = vrot.slane %v454_v33, 4  ;;  %v475_v36 = vadd.f32 %v474_v32, %v468_v31  ;;  %v205_v32 = vld [vmem:[%s1128_s30] sm:$0xff] }
  0xc6   : > { %v456_v39 = vadd.f32 %v455_v35, %v454_v33  ;;  %v476_v40 = vrot.slane %v475_v36, 4 }
  0xc8   : > { %v457_v41 = vrot.slane %v456_v39, 2  ;;  %v477_v43 = vadd.f32 %v476_v40, %v475_v36 }
  0xca   : > { %v458_v44 = vadd.f32 %v457_v41, %v456_v39  ;;  %v478_v45 = vrot.slane %v477_v43, 2 }
  0xcc   : > { %v459_v47 = vrot.slane %v458_v44, 1  ;;  %v479_v48 = vadd.f32 %v478_v45, %v477_v43 }
  0xce   : > { %v480_v53 = vrot.slane %v479_v48, 1  ;;  %v460_v56 = vadd.f32 %v459_v47, %v458_v44  ;;  %v206_v47 = vld [vmem:[%s1128_s30 + $0x8] sm:$0xff] }
  0xd0   : > { %v481_v57 = vadd.f32 %v480_v53, %v479_v48  ;;  %v207_v48 = vld [vmem:[%s1128_s30 + $0x10] sm:$0xff] }
  0xd2   : > { %v1099_v59 = vsel %vm543_vm3, %v460_v56, %v481_v57 }
 0x13d   : > { %v262_v61 = vpop.xlane.xlu0 %261 }
 0x13e   : > { %vm263_vm0 = vcmp.eq.f32.partialorder %v948_v34, %v262_v61  ;;  %v268_v0 = vcvt.f32.s32 %v262_v61 }
 0x13f   : > { %v264_v5 = vsel %vm263_vm0, %v259_v62, inf  ;;  %vm545_vm0 = vcmask 1041408  }
 0x140   : > { %265 = vmin.xlane.f32.xlu0 %v264_v5  ;;  %v269_v30 = vshll.u32 %v268_v0, 16 }
 0x141   : > { %v277_v6 = vpop.xlane.xlu1 %276  ;;  %v292_v8 = vpop.xlane.xlu0 %291 }
 0x142   : > { %vm278_vm4 = vcmp.eq.f32.partialorder %v987_v46, %v277_v6  ;;  %vm293_vm5 = vcmp.eq.f32.partialorder %v967_v42, %v292_v8  ;;  %v298_v31 = vcvt.f32.s32 %v292_v8 }
 0x143   : > { %v279_v28 = vsel %vm278_vm4, %v274_v9, inf  ;;  %v294_v37 = vsel %vm293_vm5, %v289_v11, inf  ;;  %v208_v11 = vld [vmem:[%s1128_s30 + $0x18] sm:$0xff]  ;;  %vm547_vm4 = vcmask 1042432  }
 0x144   : > { %280 = vmin.xlane.f32.xlu1 %v279_v28  ;;  %295 = vmin.xlane.f32.xlu0 %v294_v37  ;;  %v299_v43 = vshll.u32 %v298_v31, 16 }
 0x145   : > { %v307_v29 = vpop.xlane.xlu1 %306  ;;  %v322_v34 = vpop.xlane.xlu0 %321 }
 0x146   : > { %vm308_vm6 = vcmp.eq.f32.partialorder %v1004_v55, %v307_v29  ;;  %vm323_vm7 = vcmp.eq.f32.partialorder %v1023_v60, %v322_v34  ;;  %v313_v36 = vcvt.f32.s32 %v307_v29  ;;  %v328_v39 = vcvt.f32.s32 %v322_v34 }
 0x147   : > { %v309_v38 = vsel %vm308_vm6, %v304_v15, inf  ;;  %v324_v46 = vsel %vm323_vm7, %v319_v17, inf }
 0x148   : > { %310 = vmin.xlane.f32.xlu1 %v309_v38  ;;  %325 = vmin.xlane.f32.xlu0 %v324_v46  ;;  %v314_v57 = vshll.u32 %v313_v36, 16  ;;  %v329_v54 = vshll.u32 %v328_v39, 16  ;;  %v210_v38 = vld [vmem:[%s1128_s30 + $0x28] sm:$0xff] }
 0x149   : > { %v337_v42 = vpop.xlane.xlu1 %336  ;;  %v1113_v51 = vpop.xlane.xlu0 %351 }
 0x14a   : > { %vm338_vm8 = vcmp.eq.f32.partialorder %v1038_v2, %v337_v42  ;;  %vm353_vm9 = vcmp.eq.f32.partialorder %v1049_v7, %v1113_v51  ;;  %v283_v2 = vcvt.f32.s32 %v277_v6  ;;  %v343_v61 = vcvt.f32.s32 %v337_v42 }
 0x14b   : > { %v339_v52 = vsel %vm338_vm8, %v334_v21, inf  ;;  %v354_v55 = vsel %vm353_vm9, %v349_v23, inf  ;;  %v358_v29 = vcvt.f32.s32 %v1113_v51 }
 0x14c   : > { %340 = vmin.xlane.f32.xlu1 %v339_v52  ;;  %355 = vmin.xlane.f32.xlu0 %v354_v55  ;;  %v284_v35 = vshll.u32 %v283_v2, 16  ;;  %v344_v17 = vshll.u32 %v343_v61, 16  ;;  %v212_v2 = vld [vmem:[%s1128_s30 + $0x38] sm:$0xff] }
 0x14d   : > { %v1119_v60 = vpop.xlane.xlu1 %366  ;;  %v359_v23 = vshll.u32 %v358_v29, 16 }
 0x14e   : > { %vm368_vm10 = vcmp.eq.f32.partialorder %v1061_v12, %v1119_v60  ;;  %v373_v24 = vcvt.f32.s32 %v1119_v60 }
 0x14f   : > { %v369_v25 = vsel %vm368_vm10, %v364_v63, inf  ;;  %v211_v63 = vld [vmem:[%s1128_s30 + $0x30] sm:$0xff] }
 0x150   : > { %370 = vmin.xlane.f32.xlu1 %v369_v25  ;;  %v374_v25 = vshll.u32 %v373_v24, 16 }
 0x1cd   : > { %v266_v7 = vpop.xlane.xlu0 %265 }
 0x1ce   : > { %v267_v12 = vcvt.f32.s32 %v266_v7 }
 0x1d0   : > { %v270_v33 = vadd.s32 %v269_v30, %v267_v12 }
 0x1d1   : > { %v281_v40 = vpop.xlane.xlu1 %280  ;;  %v296_v41 = vpop.xlane.xlu0 %295 }
 0x1d2   : > { %vm376_vm11 = vcmp.eq.s32.totalorder %v270_v33, %v205_v32  ;;  %v282_v44 = vcvt.f32.s32 %v281_v40  ;;  %v297_v45 = vcvt.f32.s32 %v296_v41 }
 0x1d3   : > { %v655_v8 = vsel %vm376_vm11, 1.0, %v819_v49 }
 0x1d4   : > { %v285_v53 = vadd.s32 %v284_v35, %v282_v44  ;;  %v300_v56 = vadd.s32 %v299_v43, %v297_v45 }
 0x1d5   : > { %v311_v62 = vpop.xlane.xlu1 %310  ;;  %v326_v3 = vpop.xlane.xlu0 %325 }
 0x1d6   : > { %vm377_vm12 = vcmp.eq.s32.totalorder %v285_v53, %v206_v47  ;;  %v312_v4 = vcvt.f32.s32 %v311_v62  ;;  %v327_v5 = vcvt.f32.s32 %v326_v3  ;;  %vm378_vm13 = vcmp.eq.s32.totalorder %v300_v56, %v207_v48 }
 0x1d7   : > { %v657_v6 = vsel %vm378_vm13, 1.0, %v819_v49  ;;  %v656_v9 = vsel %vm377_vm12, 1.0, %v819_v49 }
 0x1d8   : > { %v315_v14 = vadd.s32 %v314_v57, %v312_v4  ;;  %v330_v28 = vadd.s32 %v329_v54, %v327_v5  ;;  %494 = vperm.xlu1 %738, %v657_v6   ;;  %v733_v37 = vpack.i.bf16 %v656_v9, %v655_v8 }
 0x1d9   : > { %v341_v34 = vpop.xlane.xlu1 %340  ;;  %v356_v15 = vpop.xlane.xlu0 %355 }
 0x1da   : > { %v342_v18 = vcvt.f32.s32 %v341_v34  ;;  %734 = vperm.xlu0 %732, %v733_v37   ;;  %vm379_vm14 = vcmp.eq.s32.totalorder %v315_v14, %v208_v11  ;;  %vm380_vm15 = vcmp.eq.s32.totalorder %v330_v28, %v209_v13  ;;  %v357_v42 = vcvt.f32.s32 %v356_v15 }
 0x1db   : > { %v658_v19 = vsel %vm379_vm14, 1.0, %v819_v49  ;;  %v659_v51 = vsel %vm380_vm15, 1.0, %v819_v49 }
 0x1dc   : > { %v345_v46 = vadd.s32 %v344_v17, %v342_v18  ;;  %499 = vperm.xlu1 %738, %v658_v19   ;;  %v360_v52 = vadd.s32 %v359_v23, %v357_v42 }
 0x1dd   : > { %v371_v21 = vpop.xlane.xlu1 %370 }
 0x1de   : > { %vm381_vm1 = vcmp.eq.s32.totalorder %v345_v46, %v210_v38  ;;  %v372_v55 = vcvt.f32.s32 %v371_v21  ;;  %vm382_vm2 = vcmp.eq.s32.totalorder %v360_v52, %v211_v63 }
 0x1df   : > { %v660_v27 = vsel %vm381_vm1, 1.0, %v819_v49  ;;  %v661_v7 = vsel %vm382_vm2, 1.0, %v819_v49 }
 0x1e0   : > { %504 = vperm.xlu1 %738, %v659_v51   ;;  %v375_v0 = vadd.s32 %v374_v25, %v372_v55 }
 0x1e2   : > { %vm383_vm3 = vcmp.eq.s32.totalorder %v375_v0, %v212_v2 }
 0x1e3   : > { %v662_v60 = vsel %vm383_vm3, 1.0, %v819_v49 }
 0x1e4   : > { %509 = vperm.xlu1 %738, %v660_v27  }
 0x1e8   : > { %514 = vperm.xlu1 %738, %v661_v7  }
 0x1ec   : > { %519 = vperm.xlu1 %738, %v662_v60  }
 0x257   : > { %v495_v30 = vpop.permute.xlu1 %494 }
 0x258   : > { %v524_v39 = vmul.f32 %v1034_v1, %v495_v30 }
 0x259   : > { %v735_v31 = vpop.permute.xlu0 %734 }
 0x25a   : > { %v737_v12 = vunpack.i.h.bf16 %v735_v31  ;;  %v736_v32 = vunpack.i.l.bf16 %v735_v31 }
 0x25b   : > { %v500_v33 = vpop.permute.xlu1 %499 }
 0x25c   : > { %v523_v35 = vmul.f32 %v737_v12, %v994_v50  ;;  %v522_v36 = vmul.f32 %v736_v32, %v1017_v58  ;;  %v525_v43 = vmul.f32 %v1054_v10, %v500_v33 }
 0x25e   : > { %v530_v40 = vadd.f32 %v523_v35, %v522_v36 }
 0x25f   : > { %v505_v41 = vpop.permute.xlu1 %504 }
 0x260   : > { %v531_v44 = vadd.f32 %v530_v40, %v524_v39  ;;  %v526_v49 = vmul.f32 %v1074_v16, %v505_v41 }
 0x262   : > { %v532_v45 = vadd.f32 %v531_v44, %v525_v43 }
 0x263   : > { %v510_v47 = vpop.permute.xlu1 %509 }
 0x264   : > { %v533_v48 = vadd.f32 %v532_v45, %v526_v49  ;;  %v527_v53 = vmul.f32 %v1083_v20, %v510_v47 }
 0x266   : > { %v534_v56 = vadd.f32 %v533_v48, %v527_v53 }
 0x267   : > { %v515_v57 = vpop.permute.xlu1 %514 }
 0x268   : > { %v528_v50 = vmul.f32 %v1089_v22, %v515_v57 }
 0x26a   : > { %v535_v1 = vadd.f32 %v534_v56, %v528_v50 }
 0x26b   : > { %v520_v58 = vpop.permute.xlu1 %519 }
 0x26c   : > { %v529_v54 = vmul.f32 %v1094_v26, %v520_v58 }
 0x26e   : > { %v536_v61 = vadd.f32 %v535_v1, %v529_v54 }
 0x270   : > { %v537_v10 = vrot.slane %v536_v61, 4 }
 0x272   : > { %v538_v62 = vadd.f32 %v537_v10, %v536_v61 }
 0x274   : > { %v539_v3 = vrot.slane %v538_v62, 2 }
 0x276   : > { %v540_v16 = vadd.f32 %v539_v3, %v538_v62 }
 0x278   : > { %v541_v4 = vrot.slane %v540_v16, 1 }
 0x27a   : > { %v542_v20 = vadd.f32 %v541_v4, %v540_v16 }
 0x27c   : > { %v546_v22 = vsel %vm545_vm0, %v1099_v59, %v542_v20 }
 0x27d   : > { %v548_v5 = vsel %vm547_vm4, %v546_v22, 0.0 }
 0x27e   : > { %551 = vst [vmem:[%s175_s6] sm:$0xff] %v548_v5 }
 0x27f   : > { %752 = shalt.err (!%p749_p5)
}
 0x280   : > { %s753_s25 = scalar_lea.hbm %s1163_s16, 128  ;;  %s757_s28 = scalar_lea.hbm %s1212_s2, 256 }
 0x281   : > { %p754_p6 = scmp.ne.s32.totalorder %s1163_s16, %s753_s25  ;;  %p758_p10 = scmp.lt.u32.totalorder %s1163_s16, %s1212_s2 }
 0x282   : > { %p759_p11 = scmp.lt.u32.totalorder %s757_s28, %s753_s25  ;;  %p761_p13 = scmp.lt.u32.totalorder %s753_s25, %s1163_s16 }
 0x283   : > { %p755_p7 = pnand %p754_p6, %p877_p4 }
 0x284   : > { %p760_p12 = por %p759_p11, %p758_p10 }
 0x285   : > { %p756_p9 = pneg %p755_p7 }
 0x286   : > { %p762_p0 = por %p761_p13, %p760_p12 }
 0x288   : > { %p763_p1 = pnand %p762_p0, %p756_p9 }
 0x28a   : > { %766 = shalt.err (!%p763_p1)
}
 0x28b   : > { %675 = dma.vmem_to_hbm [thread:$0]  (%p877_p4), %s1165_s7, 128, %s1163_s16, %s553_s18  }
 0x28c PF: > { %p681_p2 = scmp.ge.s32.totalorder %s817_s14, 2  ;;  %s578_s3 = sand.u32 1, %s797_s9  }
 0x28d   : > { %s579_s4 = scalar_lea.sflag [#allocation3], %s578_s3 }
 0x28e   : > { %p678_p3 = pnand %p681_p2, %p884_p8 }
 0x290   : > { %792 = dma.done.wait (!%p678_p3), %s579_s4, 128  }
 0x291   : > { %794 = vsyncadd (!%p678_p3), %s579_s4, 4294967168  ;;  %s15_s14 = sadd.s32 1, %s817_s14   ;;  %s1219_s9 = smov %s801_s10 }
 0x292   : > { %p12_p5 = scmp.ge.s32.totalorder %s15_s14, 4   ;;  %s1220_s10 = smov %s805_s11 }
 0x293   : > { %s1221_s11 = smov %s890_s22  ;;  %s1222_s12 = smov %s813_s13 }
 0x294   : > { %s1223_s13 = smov %s1225_s17  ;;  %14 = sbr.rel (!%p12_p5) target bundleno = 4 (0x4), region = 70 }
 0x29b   :  { %584 = vsyncpa [#allocation3], 1 }
 0x29c   :  { %586 = vsyncpa [#allocation3 + $0x1], 1 }

</bundles_post_ra>
